<compile_context>
chip_gen: v7x
topology: tpu7x:2x2x1
jax: 0.10.0
libtpu: 0.0.40
codegen_flags: <defaults>
</compile_context>

<pallas_src>
import functools
import math

import jax
import jax.numpy as jnp
from jax.experimental import pallas as pl
from jax.experimental.pallas import tpu as pltpu


def _layernorm_kernel(x_ref, gamma_ref, beta_ref, o_ref, *, eps):
    """Row-wise LayerNorm matching the PyTorch reference:
         mean = x.mean(-1); std = x.std(-1)   (unbiased, /(D-1))
         out  = a_2 * (x - mean) / (std + eps) + b_2
    """
    x = x_ref[...].astype(jnp.float32)                       # (tile_rows, D)
    d = x.shape[-1]

    # Single pass over x: row sums of x and x*x (two XLU reduces, one data pass).
    s1 = jnp.sum(x, axis=-1, keepdims=True)                  # (tile_rows, 1)
    s2 = jnp.sum(x * x, axis=-1, keepdims=True)              # (tile_rows, 1)
    mean = s1 * (1.0 / d)
    # Unbiased variance: (sum(x^2) - sum(x)*mean) / (D - 1), clamp tiny negatives.
    var = jnp.maximum((s2 - s1 * mean) * (1.0 / (d - 1)), 0.0)
    std = jnp.sqrt(var)

    # Per-row reciprocal (tile_rows x 1) instead of a full (tile_rows x D) divide.
    inv = pl.reciprocal(std + eps, approx=False)

    # gamma/beta arrive pre-cast to f32 from the wrapper.
    y = (x - mean) * inv * gamma_ref[...] + beta_ref[...]
    o_ref[...] = y.astype(o_ref.dtype)


def _pick_tile_rows(rows, d, dtype, target_block_bytes=2 * 1024 * 1024):
    """Dtype-aware, VMEM-aware row-tile selection."""
    itemsize = jnp.dtype(dtype).itemsize
    min_rows = max(8, 32 // itemsize)        # 8 (f32) / 16 (bf16) / 32 (int8)
    if rows <= min_rows:
        return rows                          # full-extent block is always legal
    t = max(min_rows, target_block_bytes // max(1, d * itemsize))
    # Keep >= ~4 grid steps so the "parallel" axis can shard across v7x's 2 TCs.
    t = min(t, pl.cdiv(rows, 4))
    t = max(min_rows, (t // min_rows) * min_rows)
    return min(t, rows)


def layernorm_pallas(x, gamma, beta, *, eps=1e-6):
    """x: (..., D); gamma/beta: (D,). Returns same shape/dtype as x."""
    orig_shape = x.shape
    d = orig_shape[-1]
    rows = math.prod(orig_shape[:-1])

    x2 = x.reshape(rows, d)
    gamma2 = jnp.asarray(gamma, jnp.float32).reshape(1, d)
    beta2 = jnp.asarray(beta, jnp.float32).reshape(1, d)

    tile_rows = _pick_tile_rows(rows, d, x.dtype)
    grid = (pl.cdiv(rows, tile_rows),)       # partial last block is masked by Pallas

    # Double-buffered x in + out, plus gamma/beta and in-kernel f32 temporaries.
    buf_bytes = tile_rows * d * jnp.dtype(x.dtype).itemsize
    vmem_limit = min(32 * 1024 * 1024, 8 * buf_bytes + 2 * d * 4 + (4 << 20))

    out = pl.pallas_call(
        functools.partial(_layernorm_kernel, eps=eps),
        out_shape=jax.ShapeDtypeStruct((rows, d), x.dtype),
        grid_spec=pltpu.PrefetchScalarGridSpec(
            num_scalar_prefetch=0,
            grid=grid,
            in_specs=[
                pl.BlockSpec((tile_rows, d), lambda i: (i, 0)),
                pl.BlockSpec((1, d), lambda i: (0, 0)),
                pl.BlockSpec((1, d), lambda i: (0, 0)),
            ],
            out_specs=pl.BlockSpec((tile_rows, d), lambda i: (i, 0)),
        ),
        compiler_params=pltpu.CompilerParams(
            dimension_semantics=("parallel",),
            vmem_limit_bytes=vmem_limit,
        ),
    )(x2, gamma2, beta2)
    return out.reshape(orig_shape)


class Encoder:
    """JAX/Pallas port of the PyTorch `Encoder(layer, N)` module:
         x = layer_N(...layer_1(x)...); return LayerNorm(x)

    The reference module is generic over `layer` (its class is not part of the
    provided source), so the stacked layers default to identity here; only the
    final LayerNorm carries concrete, well-defined compute and is implemented
    as the Pallas kernel.
    """

    def __init__(self, d_model, n_layers, layer_fn=None, eps=1e-6):
        self.n_layers = n_layers
        # TODO(synk): the concrete encoder-layer class (self-attention + FFN)
        # was not part of the provided module source; identity placeholder.
        # For a real layer, fuse this final LayerNorm into the last layer's
        # epilogue (residual add + norm in one pallas_call) to save one full
        # HBM round trip of the activations.
        self.layer_fn = layer_fn if layer_fn is not None else (lambda x: x)
        # LayerNorm.__init__: a_2 = ones(features), b_2 = zeros(features)
        self.a_2 = jnp.ones((d_model,), jnp.float32)
        self.b_2 = jnp.zeros((d_model,), jnp.float32)
        self.eps = eps

    def __call__(self, x):
        for _ in range(self.n_layers):
            x = self.layer_fn(x)
        return layernorm_pallas(x, self.a_2, self.b_2, eps=self.eps)


if __name__ == "__main__":
    # Small but lane-dense shapes: d_model multiple of 128 avoids masked stores.
    batch, seq, d_model, n_layers = 2, 64, 128, 2

    key = jax.random.PRNGKey(0)
    x = jax.random.normal(key, (batch, seq, d_model), dtype=jnp.float32)

    encoder = Encoder(d_model=d_model, n_layers=n_layers)
    out = encoder(x)
    out = jax.block_until_ready(out)

    # Sanity check against a plain-JAX reference of the same math
    # (unbiased std, eps added to std — matches the quoted PyTorch module).
    mean = jnp.mean(x, axis=-1, keepdims=True)
    std = jnp.sqrt(jnp.sum((x - mean) ** 2, axis=-1, keepdims=True) / (d_model - 1))
    ref = encoder.a_2 * (x - mean) / (std + encoder.eps) + encoder.b_2
    assert out.shape == (batch, seq, d_model)
    assert jnp.allclose(out, ref, atol=1e-4, rtol=1e-4), float(
        jnp.max(jnp.abs(out - ref)))

    print("KERNEL_OK")
</pallas_src>

<mosaic_0001>
module attributes {stable_mosaic.version = 11 : i64} {
  func.func @_layernorm_kernel(%arg0: i32, %arg1: memref<32x128xf32, #tpu.memory_space<vmem>>, %arg2: memref<1x128xf32, #tpu.memory_space<vmem>>, %arg3: memref<1x128xf32, #tpu.memory_space<vmem>>, %arg4: memref<32x128xf32, #tpu.memory_space<vmem>>) attributes {dimension_semantics = [#tpu.dimension_semantics<parallel>], iteration_bounds = array<i64: 4>, scalar_prefetch = 0 : i64, scratch_operands = 0 : i64, tpu.core_type = #tpu.core_type<tc>, window_params = [{transform_indices = @transform_0, window_bounds = array<i64: 32, 128>}, {pipeline_mode = #tpu.pipeline_mode<synchronous>, transform_indices = @transform_1, window_bounds = array<i64: 1, 128>}, {pipeline_mode = #tpu.pipeline_mode<synchronous>, transform_indices = @transform_2, window_bounds = array<i64: 1, 128>}, {transform_indices = @transform_3, window_bounds = array<i64: 32, 128>}]} {
    %c0 = arith.constant 0 : index
    %c0_0 = arith.constant 0 : index
    %0 = vector.load %arg1[%c0, %c0_0] : memref<32x128xf32, #tpu.memory_space<vmem>>, vector<32x128xf32>
    %cst = arith.constant dense<0.000000e+00> : vector<32xf32>
    %1 = vector.multi_reduction <add>, %0, %cst [1] : vector<32x128xf32> to vector<32xf32>
    %2 = vector.shape_cast %1 : vector<32xf32> to vector<32x1xf32>
    %3 = arith.mulf %0, %0 : vector<32x128xf32>
    %cst_1 = arith.constant dense<0.000000e+00> : vector<32xf32>
    %4 = vector.multi_reduction <add>, %3, %cst_1 [1] : vector<32x128xf32> to vector<32xf32>
    %5 = vector.shape_cast %4 : vector<32xf32> to vector<32x1xf32>
    %cst_2 = arith.constant 7.812500e-03 : f32
    %6 = vector.broadcast %cst_2 : f32 to vector<32x1xf32>
    %7 = arith.mulf %2, %6 : vector<32x1xf32>
    %8 = arith.mulf %2, %7 : vector<32x1xf32>
    %9 = arith.subf %5, %8 : vector<32x1xf32>
    %cst_3 = arith.constant 0.00787401571 : f32
    %10 = vector.broadcast %cst_3 : f32 to vector<32x1xf32>
    %11 = arith.mulf %9, %10 : vector<32x1xf32>
    %cst_4 = arith.constant 0.000000e+00 : f32
    %12 = vector.broadcast %cst_4 : f32 to vector<32x1xf32>
    %13 = arith.maximumf %11, %12 : vector<32x1xf32>
    %14 = math.sqrt %13 : vector<32x1xf32>
    %cst_5 = arith.constant 9.99999997E-7 : f32
    %15 = vector.broadcast %cst_5 : f32 to vector<32x1xf32>
    %16 = arith.addf %14, %15 : vector<32x1xf32>
    %17 = tpu.reciprocal %16 : vector<32x1xf32> -> vector<32x1xf32>
    %18 = vector.broadcast %7 : vector<32x1xf32> to vector<32x128xf32>
    %19 = arith.subf %0, %18 : vector<32x128xf32>
    %20 = vector.broadcast %17 : vector<32x1xf32> to vector<32x128xf32>
    %21 = arith.mulf %19, %20 : vector<32x128xf32>
    %c0_6 = arith.constant 0 : index
    %c0_7 = arith.constant 0 : index
    %22 = vector.load %arg2[%c0_6, %c0_7] : memref<1x128xf32, #tpu.memory_space<vmem>>, vector<1x128xf32>
    %23 = vector.broadcast %22 : vector<1x128xf32> to vector<32x128xf32>
    %24 = arith.mulf %21, %23 : vector<32x128xf32>
    %c0_8 = arith.constant 0 : index
    %c0_9 = arith.constant 0 : index
    %25 = vector.load %arg3[%c0_8, %c0_9] : memref<1x128xf32, #tpu.memory_space<vmem>>, vector<1x128xf32>
    %26 = vector.broadcast %25 : vector<1x128xf32> to vector<32x128xf32>
    %27 = arith.addf %24, %26 : vector<32x128xf32>
    %c0_10 = arith.constant 0 : index
    %c0_11 = arith.constant 0 : index
    %28 = vector.load %arg4[%c0_10, %c0_11] : memref<32x128xf32, #tpu.memory_space<vmem>>, vector<32x128xf32>
    tpu.vector_store %arg4[%c0_10, %c0_11], %27 {strides = array<i32>} : memref<32x128xf32, #tpu.memory_space<vmem>>, vector<32x128xf32>,
    return
  }
  func.func @transform_0(%arg0: i32) -> (i32, i32) {
    %c0_i32 = arith.constant 0 : i32
    %c0_i32_0 = arith.constant 0 : i32
    return %arg0, %c0_i32 : i32, i32
  }
  func.func @transform_1(%arg0: i32) -> (i32, i32) {
    %c0_i32 = arith.constant 0 : i32
    %c0_i32_0 = arith.constant 0 : i32
    %c0_i32_1 = arith.constant 0 : i32
    return %c0_i32, %c0_i32_0 : i32, i32
  }
  func.func @transform_2(%arg0: i32) -> (i32, i32) {
    %c0_i32 = arith.constant 0 : i32
    %c0_i32_0 = arith.constant 0 : i32
    %c0_i32_1 = arith.constant 0 : i32
    return %c0_i32, %c0_i32_0 : i32, i32
  }
  func.func @transform_3(%arg0: i32) -> (i32, i32) {
    %c0_i32 = arith.constant 0 : i32
    %c0_i32_0 = arith.constant 0 : i32
    return %arg0, %c0_i32 : i32, i32
  }
}

</mosaic_0001>

<bundles_post_ra>
// kernel: tpu_custom_call.1
= control target key start
LH: loop header
LB: loop body
LE: loop exit
PB: predicated region body
PF: predicated region fallthrough
CT: control target
= control target key end

     0   :  { %8 = vsyncpa [#allocation3], 0  ;;  %s810_s0 = inlined_call_operand.hbm [shape: f32[128,128], index: 0, kind: input, shape index: {}]   ;;  %s811_s1 = inlined_call_operand.vmem [shape: f32[1,128], index: 1, kind: input, shape index: {}]   ;;  %s812_s2 = inlined_call_operand.vmem [shape: f32[1,128], index: 2, kind: input, shape index: {}]   ;;  %s813_s3 = inlined_call_operand.hbm [shape: f32[128,128], index: 3, kind: output, shape index: {}]  }
   0x1   :  { %10 = vsyncpa [#allocation3 + $0x1], 0 }
   0x2   :  { %11 = vsyncpa [#allocation4], 0 }
   0x3   :  { %13 = vsyncpa [#allocation4 + $0x1], 0  ;;  %s600_s12 = smov 0   ;;  %s602_s13 = smov 0  }
   0x4   :  { %s604_s14 = smov 0   ;;  %s606_s15 = smov 0  }
   0x5 LB: > { %s621_s16 = sadd.s32 4294967295, %s572_s15   ;;  %s392_s17 = sadd.s32 4294967294, %s572_s15   ;;  %s572_s15 = sphi %s606_s15, %s825_s15   ;;  %s568_s14 = sphi %s604_s14, %s824_s14   ;;  %s564_s13 = sphi %s602_s13, %s823_s13   ;;  %s560_s12 = sphi %s600_s12, %s822_s12  }
   0x6   : > { %s625_s18 = sadd.s32 1, %s572_s15   ;;  %s26_s19 = sadd.s32 1, %s568_s14 }
   0x7   : > { %s23_s20 = ssub.s32 %s572_s15, %s625_s18  ;;  %p33_p0 = scmp.ne.s32.totalorder %s568_s14, %s564_s13 }
   0x8   : > { %p24_p1 = scmp.eq.s32.totalorder %s23_s20, 0  ;;  %p34_p2 = scmp.eq.s32.totalorder %s572_s15, 0 }
   0x9   : > { %p39_p3 = scmp.ne.s32.totalorder %s564_s13, %s560_s12  ;;  %p40_p4 = scmp.eq.s32.totalorder %s621_s16, 0 }
   0xa   : > { %s637_s21 = scalar_select %p24_p1, %s568_s14, %s26_s19  }
   0xb   : > { %p639_p5 = por %p34_p2, %p33_p0  ;;  %p643_p6 = por %p40_p4, %p39_p3 }
   0xc   : > { %p105_p7 = scmp.eq.s32.totalorder %s621_s16, 3  ;;  %p111_p8 = scmp.eq.s32.totalorder %s392_s17, 3 }
   0xd   : > { %p422_p9 = scmp.lt.s32.totalorder %s572_s15, 4  ;;  %s137_s26 = sand.u32 1, %s568_s14  }
   0xe   : > { %p649_p10 = por %p105_p7, %p33_p0  ;;  %p653_p11 = por %p111_p8, %p39_p3 }
   0xf   : > { %s408_s27 = sshll.u32 %s572_s15, 9  ;;  %s395_s28 = sshll.u32 %s137_s26, 5 }
  0x10   : > { %s817_s24 = scalar_select %p649_p10, 1, 0 }
  0x11   : > { %s818_s25 = scalar_select %p653_p11, 1, 0 }
  0x12   : > { %s662_s4 = scalar_lea.hbm %s810_s0, %s408_s27  ;;  %s141_s5 = scalar_lea.vmem [#allocation2], %s395_s28 }
  0x13   : > { %s148_s6 = sshll.u32 %s141_s5, 4  ;;  %p666_p12 = pnand %p422_p9, %p639_p5  ;;  %s670_s6 = int_to_ptr.vmem [resolvable:$true] %s148_s6 }
  0x14   : > { %s672_s8 = scalar_lea.sflag [#allocation3], %s137_s26  ;;  %s476_s9 = scalar_lea.hbm %s662_s4, 512 }
  0x15   : > { %p477_p13 = scmp.ne.s32.totalorder %s662_s4, %s476_s9  ;;  %p478_p0 = pneg %p666_p12 }
  0x16   : > { %s481_s17 = scalar_lea.hbm %s810_s0, 2048  ;;  %p482_p3 = scmp.lt.u32.totalorder %s662_s4, %s810_s0 }
  0x17   : > { %p479_p1 = pnand %p478_p0, %p477_p13  ;;  %p483_p4 = scmp.lt.u32.totalorder %s481_s17, %s476_s9 }
  0x18   : > { %p485_p7 = scmp.lt.u32.totalorder %s476_s9, %s662_s4 }
  0x19   : > { %p480_p2 = pneg %p479_p1  ;;  %p484_p5 = por %p483_p4, %p482_p3 }
  0x1b   : > { %p486_p8 = por %p485_p7, %p484_p5 }
  0x1d   : > { %p487_p9 = pnand %p486_p8, %p480_p2 }
  0x1f   : > { %490 = shalt.err (!%p487_p9)
}
  0x20   : > { %s491_s22 = scalar_lea.vmem %s670_s6, 512  ;;  %s574_s26 = smov [#allocation2]  }
  0x21   : > { %p492_p13 = scmp.ne.s32.totalorder %s670_s6, %s491_s22  ;;  %s496_s27 = sshll.u32 %s574_s26, 4  ;;  %s497_s27 = int_to_ptr.vmem [resolvable:$false] %s496_s27 }
  0x22   : > { %s498_s28 = scalar_lea.vmem %s497_s27, 1024  ;;  %p499_p10 = scmp.lt.s32.totalorder %s670_s6, %s497_s27 }
  0x23   : > { %p494_p1 = pnand %p492_p13, %p478_p0  ;;  %p500_p3 = scmp.lt.s32.totalorder %s498_s28, %s491_s22 }
  0x25   : > { %p495_p11 = pneg %p494_p1  ;;  %p501_p4 = por %p500_p3, %p499_p10 }
  0x27   : > { %p502_p5 = pnand %p501_p4, %p495_p11 }
  0x29   : > { %505 = shalt.err (!%p502_p5)
}
  0x2a   : > { %s575_s29 = smov 128   ;;  %s576_s30 = smov 8  }
  0x2b   : > { %417 = dma.hbm_to_vmem [thread:$0]  (!%p666_p12), %s662_s4, 512, %s670_s6, %s672_s8, %s575_s29, %s575_s29, %s576_s30  }
  0x2c   : > { %p398_p0 = scmp.ge.s32.totalorder %s572_s15, 1  ;;  %p156_p2 = scmp.lt.s32.totalorder %s572_s15, 5 }
  0x2e   : > { %p157_p7 = pnand %p398_p0, %p156_p2 }
  0x2f   : > { %s703_s5 = sand.u32 (!%p157_p7), 1, %s564_s13  }
  0x30   : > { %160 = sbr.rel (%p157_p7) target bundleno = 267 (0x10b), region = 32  ;;  %s399_s9 = sshll.u32 (!%p157_p7), %s703_s5, 5 }
  0x31   : > { %s163_s10 = scalar_lea.sflag (!%p157_p7), [#allocation3], %s703_s5  ;;  %s166_s11 = scalar_lea.vmem (!%p157_p7), [#allocation2], %s399_s9 }
  0x37   : > { %551 = dma.done.wait (%p643_p6), %s163_s10, 512  }
  0x38   : > { %553 = vsyncadd (%p643_p6), %s163_s10, 4294966784  ;;  %v713_v0 = vld [vmem:[%s166_s11 + $0x10] sm:$0xff]  ;;  %v715_v1 = vld [vmem:[%s166_s11] sm:$0xff]  ;;  %s188_s8 = scalar_lea.vmem [#allocation5], %s399_s9  ;;  %s409_s17 = sshll.u32 %s621_s16, 9 }
  0x39   : > { %199 = vadd.xlane.f32.xlu1 %v713_v0  ;;  %195 = vadd.xlane.f32.xlu0 %v715_v1  ;;  %v719_v2 = vld [vmem:[%s166_s11 + $0x18] sm:$0xff]  ;;  %v721_v3 = vld [vmem:[%s166_s11 + $0x8] sm:$0xff]  ;;  %v203_v5 = vmul.f32 %v715_v1, %v715_v1  ;;  %v205_v7 = vmul.f32 %v713_v0, %v713_v0  ;;  %v401_v63 = vld [vmem:[%s811_s1] ss:$0 sm:$0xff]  ;;  %s319_s19 = sshll.u32 %s188_s8, 4  ;;  %s765_s26 = scalar_lea.hbm %s813_s3, %s409_s17  ;;  %s767_s19 = int_to_ptr.vmem [resolvable:$true] %s319_s19 }
  0x3a   : > { %v204_v4 = vmul.f32 %v721_v3, %v721_v3  ;;  %v206_v6 = vmul.f32 %v719_v2, %v719_v2  ;;  %s306_s27 = scalar_lea.sflag [#allocation4], %s703_s5  ;;  %s506_s28 = scalar_lea.vmem %s767_s19, 512 }
  0x3b   : > { %p507_p6 = scmp.ne.s32.totalorder %s767_s19, %s506_s28  ;;  %p820_p10 = scmp.ne.s32.totalorder %s817_s24, 0 }
  0x3c   : > { %s577_s16 = smov [#allocation5]  }
  0x3d   : > { %201 = vadd.xlane.f32.xlu1 %v719_v2  ;;  %197 = vadd.xlane.f32.xlu0 %v721_v3  ;;  %p508_p11 = pnand %p507_p6, %p820_p10  ;;  %s510_s29 = sshll.u32 %s577_s16, 4  ;;  %s511_s29 = int_to_ptr.vmem [resolvable:$false] %s510_s29 }
  0x3e   : > { %s512_s30 = scalar_lea.vmem %s511_s29, 1024  ;;  %p513_p8 = scmp.lt.s32.totalorder %s767_s19, %s511_s29 }
  0x3f   : > { %p509_p12 = pneg %p508_p11  ;;  %p514_p9 = scmp.lt.s32.totalorder %s512_s30, %s506_s28 }
  0x41   : > { %209 = vadd.xlane.f32.xlu1 %v204_v4  ;;  %207 = vadd.xlane.f32.xlu0 %v203_v5  ;;  %p515_p13 = por %p514_p9, %p513_p8 }
  0x43   : > { %p516_p1 = pnand %p515_p13, %p509_p12 }
  0x45   : > { %213 = vadd.xlane.f32.xlu1 %v206_v6  ;;  %211 = vadd.xlane.f32.xlu0 %v205_v7  ;;  %v402_v7 = vld [vmem:[%s812_s2] ss:$0 sm:$0xff] }
  0xc6   : > { %v200_v8 = vpop.xlane.xlu1 %199  ;;  %v196_v9 = vpop.xlane.xlu0 %195 }
  0xc7   : > { %v733_v10 = vmul.f32 0.0078125, %v196_v9  ;;  %v737_v14 = vmul.f32 0.0078125, %v200_v8 }
  0xc9   : > { %v219_v15 = vmul.f32 %v733_v10, %v196_v9  ;;  %v221_v22 = vmul.f32 %v737_v14, %v200_v8  ;;  %v271_v62 = vsub.f32 %v715_v1, %v733_v10  ;;  %v273_v1 = vsub.f32 %v713_v0, %v737_v14 }
  0xca   : > { %v202_v11 = vpop.xlane.xlu1 %201  ;;  %v198_v12 = vpop.xlane.xlu0 %197 }
  0xcb   : > { %v735_v13 = vmul.f32 0.0078125, %v198_v12  ;;  %v740_v16 = vmul.f32 0.0078125, %v202_v11 }
  0xcd   : > { %v220_v17 = vmul.f32 %v735_v13, %v198_v12  ;;  %v222_v23 = vmul.f32 %v740_v16, %v202_v11  ;;  %v272_v60 = vsub.f32 %v721_v3, %v735_v13  ;;  %v274_v3 = vsub.f32 %v719_v2, %v740_v16 }
  0xce   : > { %v210_v18 = vpop.xlane.xlu1 %209  ;;  %v208_v19 = vpop.xlane.xlu0 %207 }
  0xcf   : > { %v224_v20 = vsub.f32 %v210_v18, %v220_v17  ;;  %v223_v21 = vsub.f32 %v208_v19, %v219_v15 }
  0xd1   : > { %v228_v24 = vmul.f32 0.007874016, %v224_v20  ;;  %v227_v25 = vmul.f32 0.007874016, %v223_v21 }
  0xd2   : > { %v214_v26 = vpop.xlane.xlu1 %213  ;;  %v212_v27 = vpop.xlane.xlu0 %211 }
  0xd3   : > { %v232_v28 = vmax.f32 %v228_v24, 0.0  ;;  %v231_v29 = vmax.f32 %v227_v25, 0.0  ;;  %v226_v30 = vsub.f32 %v214_v26, %v222_v23  ;;  %v225_v31 = vsub.f32 %v212_v27, %v221_v22 }
  0xd5   : > { %460 = vrsqrt.f32 %v232_v28  ;;  %v230_v32 = vmul.f32 0.007874016, %v226_v30  ;;  %v229_v33 = vmul.f32 0.007874016, %v225_v31  ;;  %vm244_vm0 = vcmp.eq.f32.partialorder %v232_v28, inf }
  0xd6   : > { %462 = vrsqrt.f32 %v231_v29  ;;  %v247_v39 = vand.u32 2147483648, %v232_v28  ;;  %vm246_vm1 = vcmp.eq.f32.partialorder %v232_v28, 0.0  ;;  %vm237_vm2 = vcmp.eq.f32.partialorder %v231_v29, inf }
  0xd7   : > { %v234_v34 = vmax.f32 %v230_v32, 0.0  ;;  %v233_v35 = vmax.f32 %v229_v33, 0.0  ;;  %v240_v42 = vand.u32 2147483648, %v231_v29  ;;  %vm239_vm3 = vcmp.eq.f32.partialorder %v231_v29, 0.0 }
  0xd9   : > { %464 = vrsqrt.f32 %v234_v34  ;;  %vm258_vm4 = vcmp.eq.f32.partialorder %v234_v34, inf  ;;  %v261_v51 = vand.u32 2147483648, %v234_v34  ;;  %vm260_vm5 = vcmp.eq.f32.partialorder %v234_v34, 0.0 }
  0xda   : > { %466 = vrsqrt.f32 %v233_v35  ;;  %vm251_vm6 = vcmp.eq.f32.partialorder %v233_v35, inf  ;;  %v254_v54 = vand.u32 2147483648, %v233_v35  ;;  %vm253_vm7 = vcmp.eq.f32.partialorder %v233_v35, 0.0 }
  0xdf   : > { %v461_v36 = vpop.eup %460 }
  0xe0   : > { %v463_v37 = vpop.eup %462  ;;  %v243_v38 = vmul.f32 %v461_v36, %v232_v28 }
  0xe1   : > { %v236_v40 = vmul.f32 %v463_v37, %v231_v29 }
  0xe2   : > { %v245_v41 = vsel %vm244_vm0, %v232_v28, %v243_v38 }
  0xe3   : > { %v248_v43 = vsel %vm246_vm1, %v247_v39, %v245_v41  ;;  %v238_v44 = vsel %vm237_vm2, %v231_v29, %v236_v40  ;;  %v465_v47 = vpop.eup %464 }
  0xe4   : > { %v264_v45 = vadd.f32 1e-06, %v248_v43  ;;  %v241_v46 = vsel %vm239_vm3, %v240_v42, %v238_v44  ;;  %v467_v49 = vpop.eup %466  ;;  %v257_v50 = vmul.f32 %v465_v47, %v234_v34 }
  0xe5   : > { %v263_v48 = vadd.f32 1e-06, %v241_v46  ;;  %v250_v52 = vmul.f32 %v467_v49, %v233_v35 }
  0xe6   : > { %468 = vrcp.f32 %v264_v45  ;;  %v259_v53 = vsel %vm258_vm4, %v234_v34, %v257_v50 }
  0xe7   : > { %470 = vrcp.f32 %v263_v48  ;;  %v262_v55 = vsel %vm260_vm5, %v261_v51, %v259_v53  ;;  %v252_v56 = vsel %vm251_vm6, %v233_v35, %v250_v52 }
  0xe8   : > { %v266_v57 = vadd.f32 1e-06, %v262_v55  ;;  %v255_v58 = vsel %vm253_vm7, %v254_v54, %v252_v56 }
  0xe9   : > { %v265_v59 = vadd.f32 1e-06, %v255_v58 }
  0xea   : > { %472 = vrcp.f32 %v266_v57 }
  0xeb   : > { %474 = vrcp.f32 %v265_v59 }
  0xf0   : > { %v469_v61 = vpop.eup %468 }
  0xf1   : > { %v471_v4 = vpop.eup %470  ;;  %v276_v5 = vmul.f32 %v469_v61, %v272_v60 }
  0xf2   : > { %v275_v6 = vmul.f32 %v471_v4, %v271_v62 }
  0xf3   : > { %v287_v8 = vmul.f32 %v401_v63, %v276_v5 }
  0xf4   : > { %v286_v9 = vmul.f32 %v401_v63, %v275_v6  ;;  %v473_v12 = vpop.eup %472 }
  0xf5   : > { %v298_v11 = vadd.f32 %v402_v7, %v287_v8  ;;  %v475_v13 = vpop.eup %474  ;;  %v278_v15 = vmul.f32 %v473_v12, %v274_v3 }
  0xf6   : > { %v297_v10 = vadd.f32 %v402_v7, %v286_v9  ;;  %v277_v17 = vmul.f32 %v475_v13, %v273_v1 }
  0xf7   : > { %302 = vst [vmem:[%s188_s8 + $0x8] sm:$0xff] %v298_v11  ;;  %v289_v18 = vmul.f32 %v401_v63, %v278_v15 }
  0xf8   : > { %301 = vst [vmem:[%s188_s8] sm:$0xff] %v297_v10  ;;  %v288_v19 = vmul.f32 %v401_v63, %v277_v17 }
  0xf9   : > { %v300_v2 = vadd.f32 %v402_v7, %v289_v18 }
  0xfa   : > { %v299_v0 = vadd.f32 %v402_v7, %v288_v19 }
  0xfb   : > { %304 = vst [vmem:[%s188_s8 + $0x18] sm:$0xff] %v300_v2 }
  0xfc   : > { %303 = vst [vmem:[%s188_s8 + $0x10] sm:$0xff] %v299_v0 }
  0xfd   : > { %519 = shalt.err (!%p516_p1)
}
  0xfe   : > { %s520_s9 = scalar_lea.hbm %s765_s26, 512  ;;  %s524_s23 = scalar_lea.hbm %s813_s3, 2048 }
  0xff   : > { %p521_p3 = scmp.ne.s32.totalorder %s765_s26, %s520_s9  ;;  %p525_p0 = scmp.lt.u32.totalorder %s765_s26, %s813_s3 }
 0x100   : > { %p526_p2 = scmp.lt.u32.totalorder %s524_s23, %s520_s9  ;;  %p528_p6 = scmp.lt.u32.totalorder %s520_s9, %s765_s26 }
 0x101   : > { %p522_p4 = pnand %p521_p3, %p820_p10 }
 0x102   : > { %p527_p7 = por %p526_p2, %p525_p0 }
 0x103   : > { %p523_p5 = pneg %p522_p4 }
 0x104   : > { %p529_p11 = por %p528_p6, %p527_p7 }
 0x106   : > { %p530_p12 = pnand %p529_p11, %p523_p5 }
 0x108   : > { %533 = shalt.err (!%p530_p12)
}
 0x109   : > { %s578_s7 = smov 128   ;;  %s579_s8 = smov 8  }
 0x10a   : > { %412 = dma.vmem_to_hbm [thread:$0]  (%p820_p10), %s767_s19, 512, %s765_s26, %s306_s27, %s578_s7, %s578_s7, %s579_s8  }
 0x10b PF: > { %p423_p8 = scmp.ge.s32.totalorder %s572_s15, 2  ;;  %s334_s17 = sand.u32 1, %s560_s12  }
 0x10c   : > { %p821_p9 = scmp.ne.s32.totalorder %s818_s25, 0  ;;  %s335_s20 = scalar_lea.sflag [#allocation4], %s334_s17 }
 0x10e   : > { %p419_p13 = pnand %p423_p8, %p821_p9 }
 0x110   : > { %555 = dma.done.wait (!%p419_p13), %s335_s20, 512  }
 0x111   : > { %557 = vsyncadd (!%p419_p13), %s335_s20, 4294966784  ;;  %p16_p1 = scmp.ge.s32.totalorder %s625_s18, 6   ;;  %s822_s12 = smov %s564_s13 }
 0x112   : > { %s823_s13 = smov %s568_s14  ;;  %s824_s14 = smov %s637_s21 }
 0x113   : > { %s825_s15 = smov %s625_s18  ;;  %18 = sbr.rel (!%p16_p1) target bundleno = 5 (0x5), region = 77 }
 0x11a   :  { %340 = vsyncpa [#allocation3], 1 }
 0x11b   :  { %342 = vsyncpa [#allocation3 + $0x1], 1 }
 0x11c   :  { %343 = vsyncpa [#allocation4], 1 }
 0x11d   :  { %345 = vsyncpa [#allocation4 + $0x1], 1 }

</bundles_post_ra>
